<compile_context>
chip_gen: v5e
topology: v5e:2x2
jax: 0.10.0
libtpu: 0.0.40
codegen_flags: <defaults>
</compile_context>

<pallas_src>
import jax
import jax.numpy as jnp
from jax import lax
from jax.experimental import pallas as pl
from jax.experimental.pallas import tpu as pltpu
from jax.scipy.linalg import block_diag


def _round_up(x, m):
    return ((x + m - 1) // m) * m


def _mlp2_kernel(x_ref, w1_ref, b1_ref, w2_ref, b2_ref, o_ref):
    # Layer 1 on the MXU: lane-dense (tb8, 128) @ (128, p*n1), f32 accumulation.
    # The bf16 cast of the streamed x tile is a VPU op (free; no extra HBM pass).
    xb = x_ref[...].astype(jnp.bfloat16)
    h = jnp.dot(xb, w1_ref[...], preferred_element_type=jnp.float32)
    h = jnp.maximum(h + b1_ref[...], 0.0)                 # bias + ReLU in f32 (VPU)

    # Layer 2: block-diagonal contraction (tb8, p*n1) @ (p*n1, p) -> (tb8, p).
    # Column r of the result is y for packed sub-row r; no activation transpose.
    y = jnp.dot(h.astype(jnp.bfloat16), w2_ref[...],
                preferred_element_type=jnp.float32)
    o_ref[...] = (y + b2_ref[0]).astype(o_ref.dtype)


def nn_2l_forward(x, w1, b1, w2, b2, *, tile_b=65536):
    """Forward pass of NN_2l.

    Args:
      x:  [B, n_inputs] float32
      w1: [n_inputs, n1] float32   (transposed PyTorch weight: layers[0].weight.T)
      b1: [n1]           float32
      w2: [n1, 1]        float32   (transposed PyTorch weight: layers[2].weight.T)
      b2: [1]            float32
      tile_b: batch tile size in (un-packed) rows; 32K-128K amortizes grid overhead.
    Returns:
      [B, 1] float32
    """
    B, n_inputs = x.shape
    n1 = w1.shape[1]

    if n_inputs > 128 or 128 % n_inputs != 0:
        # TODO(synk): general n_inputs needs a different packing factor (or the
        # unpacked (tb, n_inputs) layout); only the divides-128 case is wired up.
        raise NotImplementedError("n_inputs must divide 128 for the packed layout")
    p = 128 // n_inputs                       # rows packed per 128-lane vreg row

    # ---- pack x: (B, n_inputs) -> (B/p, 128). The reshape is a free row-major
    # merge; only a ragged B % p != 0 tail forces a (tiny) pad pass.
    Bp = _round_up(B, p)
    if Bp != B:
        x = jnp.pad(x, ((0, Bp - B), (0, 0)))
    n_packed = Bp // p
    x_packed = x.reshape(n_packed, 128)

    # ---- once-built tiny packed parameters (bf16 MXU operands, f32 biases) ----
    w1_bd = block_diag(*([w1] * p)).astype(jnp.bfloat16)                 # (128, p*n1)
    w2_bd = block_diag(*([w2.reshape(n1, 1)] * p)).astype(jnp.bfloat16)  # (p*n1, p)
    b1_t = jnp.tile(b1.astype(jnp.float32).reshape(n1), p).reshape(1, p * n1)
    b2_s = b2.astype(jnp.float32).reshape(1)

    # ---- batch tiling over packed rows ----
    tb8_req = max(8, (int(tile_b) // (8 * p)) * 8)      # requested packed-tile rows
    if n_packed <= 8:
        tb8 = n_packed                                  # single full-array block
    else:
        # Keep >= 4 tiles so v7x's two TensorCores each get >= 2 ("parallel" axis),
        # but never exceed the requested tile (VMEM cap).
        tb8 = min(tb8_req, _round_up(pl.cdiv(n_packed, 4), 8))
    num_tiles = pl.cdiv(n_packed, tb8)

    grid_spec = pltpu.PrefetchScalarGridSpec(
        num_scalar_prefetch=0,
        grid=(num_tiles,),
        in_specs=[
            pl.BlockSpec((tb8, 128), lambda i: (i, 0)),          # x: streamed per tile
            pl.BlockSpec((128, p * n1), lambda i: (0, 0)),       # W1 blk-diag: resident
            pl.BlockSpec((1, p * n1), lambda i: (0, 0)),         # b1 tiled: resident
            pl.BlockSpec((p * n1, p), lambda i: (0, 0)),         # W2 blk-diag: resident
            pl.BlockSpec(memory_space=pltpu.MemorySpace.SMEM),   # b2: scalar in SMEM
        ],
        out_specs=pl.BlockSpec((tb8, p), lambda i: (i, 0)),      # packed y, full width
    )

    out = pl.pallas_call(
        _mlp2_kernel,
        out_shape=jax.ShapeDtypeStruct((n_packed, p), jnp.float32),
        grid_spec=grid_spec,
        compiler_params=pltpu.CompilerParams(
            dimension_semantics=("parallel",),   # shard batch tiles across TCs (v7x)
            vmem_limit_bytes=48 * 1024 * 1024,   # fits v7x's 64 MiB/TC with headroom
        ),
    )(x_packed, w1_bd, b1_t, w2_bd, b2_s)

    out = out.reshape(Bp, 1)                     # free: row-major un-pack to (Bp, 1)
    return out if Bp == B else out[:B]


def init_params(key, n_inputs, n1):
    """PyTorch nn.Linear-style init (U[-1/sqrt(fan_in), 1/sqrt(fan_in)])."""
    k1, k2, k3, k4 = jax.random.split(key, 4)
    bound1 = 1.0 / jnp.sqrt(jnp.float32(n_inputs))
    bound2 = 1.0 / jnp.sqrt(jnp.float32(n1))
    w1 = jax.random.uniform(k1, (n_inputs, n1), jnp.float32, -bound1, bound1)
    b1 = jax.random.uniform(k2, (n1,), jnp.float32, -bound1, bound1)
    w2 = jax.random.uniform(k3, (n1, 1), jnp.float32, -bound2, bound2)
    b2 = jax.random.uniform(k4, (1,), jnp.float32, -bound2, bound2)
    return w1, b1, w2, b2


if __name__ == "__main__":
    key = jax.random.PRNGKey(0)
    n_inputs, n1 = 16, 32
    kx, kp = jax.random.split(key)
    w1, b1, w2, b2 = init_params(kp, n_inputs, n1)

    fwd = jax.jit(nn_2l_forward, static_argnames=("tile_b",))

    # Small tile sizes here just to exercise the multi-tile grid, the masked partial
    # last tile, and (for B=500) the ragged B % 8 != 0 path.  Production default is
    # tile_b=65536.
    for B, tile_b in ((1000, 512), (500, 128)):
        x = jax.random.normal(jax.random.fold_in(kx, B), (B, n_inputs), jnp.float32)
        out = jax.block_until_ready(fwd(x, w1, b1, w2, b2, tile_b=tile_b))
        assert out.shape == (B, 1)

        # (a) Tight check against a reference that applies the same bf16 operand
        #     rounding the MXU sees (catches any structural / indexing bug).
        xb = x.astype(jnp.bfloat16).astype(jnp.float32)
        w1b = w1.astype(jnp.bfloat16).astype(jnp.float32)
        w2b = w2.astype(jnp.bfloat16).astype(jnp.float32)
        h = jnp.maximum(jnp.dot(xb, w1b, precision=lax.Precision.HIGHEST) + b1, 0.0)
        ref_mxu = jnp.dot(h.astype(jnp.bfloat16).astype(jnp.float32), w2b,
                          precision=lax.Precision.HIGHEST) + b2
        err = float(jnp.max(jnp.abs(out - ref_mxu)))
        assert err < 1e-2, err

        # (b) Fidelity check against the exact f32 PyTorch forward; the tolerance is
        #     the documented bf16-operand rounding of the MXU feed (~0.2% relative).
        h32 = jnp.maximum(jnp.dot(x, w1, precision=lax.Precision.HIGHEST) + b1, 0.0)
        ref32 = jnp.dot(h32, w2, precision=lax.Precision.HIGHEST) + b2
        err32 = float(jnp.max(jnp.abs(out - ref32)))
        assert err32 < 8e-2, err32

    print("KERNEL_OK")
</pallas_src>

<mosaic_0001>
module attributes {stable_mosaic.version = 11 : i64} {
  func.func @_mlp2_kernel(%arg0: i32, %arg1: memref<32x128xf32, #tpu.memory_space<vmem>>, %arg2: memref<128x256xbf16, #tpu.memory_space<vmem>>, %arg3: memref<1x256xf32, #tpu.memory_space<vmem>>, %arg4: memref<256x8xbf16, #tpu.memory_space<vmem>>, %arg5: memref<1xf32, #tpu.memory_space<smem>>, %arg6: memref<32x8xf32, #tpu.memory_space<vmem>>) attributes {dimension_semantics = [#tpu.dimension_semantics<parallel>], iteration_bounds = array<i64: 4>, scalar_prefetch = 0 : i64, scratch_operands = 0 : i64, tpu.core_type = #tpu.core_type<tc>, window_params = [{transform_indices = @transform_0, window_bounds = array<i64: 32, 128>}, {pipeline_mode = #tpu.pipeline_mode<synchronous>, transform_indices = @transform_1, window_bounds = array<i64: 128, 256>}, {pipeline_mode = #tpu.pipeline_mode<synchronous>, transform_indices = @transform_2, window_bounds = array<i64: 1, 256>}, {pipeline_mode = #tpu.pipeline_mode<synchronous>, transform_indices = @transform_3, window_bounds = array<i64: 256, 8>}, {transform_indices = @transform_4, window_bounds = array<i64: 1>}, {transform_indices = @transform_5, window_bounds = array<i64: 32, 8>}]} {
    %c0 = arith.constant 0 : index
    %c0_0 = arith.constant 0 : index
    %0 = vector.load %arg1[%c0, %c0_0] : memref<32x128xf32, #tpu.memory_space<vmem>>, vector<32x128xf32>
    %1 = arith.truncf %0 : vector<32x128xf32> to vector<32x128xbf16>
    %c0_1 = arith.constant 0 : index
    %c0_2 = arith.constant 0 : index
    %2 = vector.load %arg2[%c0_1, %c0_2] : memref<128x256xbf16, #tpu.memory_space<vmem>>, vector<128x256xbf16>
    %cst = arith.constant dense<0.000000e+00> : vector<32x256xf32>
    %3 = tpu.matmul %1, %2, %cst {dimension_numbers = #tpu.dot_dimension_numbers<[1], [0], [0], [1], [0, 0, 1, 1], [], []>} : vector<32x128xbf16>, vector<128x256xbf16>, vector<32x256xf32> -> vector<32x256xf32>
    %c0_3 = arith.constant 0 : index
    %c0_4 = arith.constant 0 : index
    %4 = vector.load %arg3[%c0_3, %c0_4] : memref<1x256xf32, #tpu.memory_space<vmem>>, vector<1x256xf32>
    %5 = vector.broadcast %4 : vector<1x256xf32> to vector<32x256xf32>
    %6 = arith.addf %3, %5 : vector<32x256xf32>
    %cst_5 = arith.constant 0.000000e+00 : f32
    %7 = vector.broadcast %cst_5 : f32 to vector<32x256xf32>
    %8 = arith.maximumf %6, %7 : vector<32x256xf32>
    %9 = arith.truncf %8 : vector<32x256xf32> to vector<32x256xbf16>
    %c0_6 = arith.constant 0 : index
    %c0_7 = arith.constant 0 : index
    %10 = vector.load %arg4[%c0_6, %c0_7] : memref<256x8xbf16, #tpu.memory_space<vmem>>, vector<256x8xbf16>
    %cst_8 = arith.constant dense<0.000000e+00> : vector<32x8xf32>
    %11 = tpu.matmul %9, %10, %cst_8 {dimension_numbers = #tpu.dot_dimension_numbers<[1], [0], [0], [1], [0, 0, 1, 1], [], []>} : vector<32x256xbf16>, vector<256x8xbf16>, vector<32x8xf32> -> vector<32x8xf32>
    %c0_9 = arith.constant 0 : index
    %12 = memref.load %arg5[%c0_9] : memref<1xf32, #tpu.memory_space<smem>>
    %13 = vector.broadcast %12 : f32 to vector<32x8xf32>
    %14 = arith.addf %11, %13 : vector<32x8xf32>
    %c0_10 = arith.constant 0 : index
    %c0_11 = arith.constant 0 : index
    %15 = vector.load %arg6[%c0_10, %c0_11] : memref<32x8xf32, #tpu.memory_space<vmem>>, vector<32x8xf32>
    tpu.vector_store %arg6[%c0_10, %c0_11], %14 {strides = array<i32>} : memref<32x8xf32, #tpu.memory_space<vmem>>, vector<32x8xf32>,
    return
  }
  func.func @transform_0(%arg0: i32) -> (i32, i32) {
    %c0_i32 = arith.constant 0 : i32
    %c0_i32_0 = arith.constant 0 : i32
    return %arg0, %c0_i32 : i32, i32
  }
  func.func @transform_1(%arg0: i32) -> (i32, i32) {
    %c0_i32 = arith.constant 0 : i32
    %c0_i32_0 = arith.constant 0 : i32
    %c0_i32_1 = arith.constant 0 : i32
    return %c0_i32, %c0_i32_0 : i32, i32
  }
  func.func @transform_2(%arg0: i32) -> (i32, i32) {
    %c0_i32 = arith.constant 0 : i32
    %c0_i32_0 = arith.constant 0 : i32
    %c0_i32_1 = arith.constant 0 : i32
    return %c0_i32, %c0_i32_0 : i32, i32
  }
  func.func @transform_3(%arg0: i32) -> (i32, i32) {
    %c0_i32 = arith.constant 0 : i32
    %c0_i32_0 = arith.constant 0 : i32
    %c0_i32_1 = arith.constant 0 : i32
    return %c0_i32, %c0_i32_0 : i32, i32
  }
  func.func @transform_4(%arg0: i32) -> i32 {
    %c0_i32 = arith.constant 0 : i32
    %c0_i32_0 = arith.constant 0 : i32
    return %c0_i32 : i32
  }
  func.func @transform_5(%arg0: i32) -> (i32, i32) {
    %c0_i32 = arith.constant 0 : i32
    %c0_i32_0 = arith.constant 0 : i32
    return %arg0, %c0_i32 : i32, i32
  }
}

</mosaic_0001>

<bundles_post_ra>
// kernel: tile.8
= control target key start
LH: loop header
LB: loop body
LE: loop exit
PB: predicated region body
PF: predicated region fallthrough
CT: control target
= control target key end

     0   :  { %s22_s0 = inlined_call_operand.vmem [shape: f32[32], index: 0, kind: input, shape index: {}]   ;;  %s23_s1 = inlined_call_operand.vmem [shape: f32[8,32], index: 1, kind: output, shape index: {}]  }
   0x1   :  { %v4_v0 = vld [vmem:[%s22_s0] ss:$0 sm:$0xff] }
   0x2   :  { %5 = vst [vmem:[%s23_s1] sm:$0xff] %v4_v0 }

// kernel: tile.9
= control target key start
LH: loop header
LB: loop body
LE: loop exit
PB: predicated region body
PF: predicated region fallthrough
CT: control target
= control target key end

     0   :  { %s7_s6 = smov 3  ;;  %s46_s9 = smov 96   ;;  %vm4_vm0 = vcmask 261120   ;;  %vm11_vm1 = vcmask 1048320   ;;  %vm18_vm2 = vcmask 785920   ;;  %vm25_vm3 = vcmask 523520   ;;  %s77_s0 = inlined_call_operand.vmem [shape: f32[8,32], index: 0, kind: input, shape index: {}]   ;;  %s78_s1 = inlined_call_operand.vmem [shape: f32[1,256], index: 1, kind: output, shape index: {}]  }
   0x1   :  { %v39_v0 = vld [vmem:[%s77_s0 + $0x3] ss:$4 sm:%s7_s6]   ;;  %s21_s10 = smov 3  ;;  %s14_s13 = smov 3 }
   0x2   :  { %9 = vrot.lane.b32.xlu0 %v39_v0, %s46_s9  ;;  %v41_v1 = vld [vmem:[%s77_s0 + $0x1] ss:$4 sm:%s21_s10]   ;;  %s47_s14 = smov 32   ;;  %s48_s17 = smov 64  }
   0x3   :  { %23 = vrot.lane.b32.xlu1 %v41_v1, %s47_s14  ;;  %v40_v2 = vld [vmem:[%s77_s0 + $0x2] ss:$4 sm:%s14_s13]   ;;  %s2_s18 = smov 3 }
   0x4   :  { %v3_v3 = vld [vmem:[%s77_s0] ss:$4 sm:%s2_s18]  }
   0x5   :  { %5 = vst.msk [vmem:[#allocation0] ss:$8 sm:$0x3] %vm4_vm0, %v3_v3  }
   0xa   :  { %16 = vrot.lane.b32.xlu0 %v40_v2, %s48_s17 }
  0x74   :  { %v10_v4 = vpop.permute.xlu0 %9  }
  0x75   :  { %12 = vst.msk [vmem:[#allocation0] ss:$8 sm:$0x3] %vm11_vm1, %v10_v4   ;;  %v24_v5 = vpop.permute.xlu1 %23  }
  0x7c   :  { %v17_v6 = vpop.permute.xlu0 %16  }
  0x7d   :  { %19 = vst.msk [vmem:[#allocation0] ss:$8 sm:$0x3] %vm18_vm2, %v17_v6  }
  0x7e   :  { %26 = vst.msk [vmem:[#allocation0] ss:$8 sm:$0x3] %vm25_vm3, %v24_v5  }
  0x85   :  { %v29_v7 = vld [vmem:[#allocation0] sm:$0x1]  ;;  %v34_v8 = vld [vmem:[#allocation0 + $0x8] sm:$0x1] }
  0x86   :  { %32 = vst [vmem:[%s78_s1] sm:$0x1] %v29_v7 }
  0x87   :  { %42 = vst [vmem:[%s78_s1 + $0x1] sm:$0x1] %v34_v8 }

// kernel: nn_2l_forward.1
= control target key start
LH: loop header
LB: loop body
LE: loop exit
PB: predicated region body
PF: predicated region fallthrough
CT: control target
= control target key end

     0   :  { %s836_s20 = smov 0   ;;  %s1013_s0 = inlined_call_operand.vmem [shape: f32[125,128], index: 0, kind: input, shape index: {}]   ;;  %s1014_s1 = inlined_call_operand.vmem [shape: bf16[128,256], index: 1, kind: input, shape index: {}]   ;;  %s1015_s2 = inlined_call_operand.vmem [shape: f32[1,256], index: 2, kind: input, shape index: {}]   ;;  %s1016_s3 = inlined_call_operand.vmem [shape: bf16[256,8], index: 3, kind: input, shape index: {}]   ;;  %s1017_s4 = inlined_call_operand.<no memory space> [shape: f32[1], index: 4, kind: input, shape index: {}]   ;;  %s1018_s5 = inlined_call_operand.vmem [shape: f32[125,8], index: 5, kind: output, shape index: {}]  }
   0x1   :  { %10 = sst [smem:[#allocation2]] %s1017_s4 }
   0x2 LB: > { %s616_s21 = sadd.s32 4294967295, %s801_s20   ;;  %p620_p0 = scmp.ge.s32.totalorder %s801_s20, 1  ;;  %s801_s20 = sphi %s836_s20, %s16_s20  }
   0x3   : > { %p189_p1 = scmp.lt.s32.totalorder %s801_s20, 5 }
   0x5   : > { %p190_p2 = pnand %p620_p0, %p189_p1 }
   0x6   : > { %s621_s29 = sshll.u32 (!%p190_p2), %s616_s21, 2  ;;  %s419_s28 = sld [smem:[#allocation2]] (!%p190_p2) }
   0x7   : > { %193 = sbr.rel (%p190_p2) target bundleno = 347 (0x15b), region = 40  ;;  %p218_p3 = scmp.lt.s32.totalorder (!%p190_p2), %s621_s29, 15 }
   0xc   : > { %v683_v0 = vld [vmem:[%s1014_s1 + $0x70] sm:$0xf]  ;;  %v770_v1 = vld [vmem:[%s1014_s1 + $0x74] sm:$0xf0]  ;;  %v769_v2 = vld [vmem:[%s1014_s1 + $0x74] sm:$0xf] }
   0xd   : > { %v684_v3 = vor.u32 %v770_v1, %v683_v0  ;;  %v685_v4 = vld [vmem:[%s1014_s1 + $0x78] sm:$0xf0]  ;;  %v675_v5 = vld [vmem:[%s1014_s1 + $0x60] sm:$0xf]  ;;  %v768_v6 = vld [vmem:[%s1014_s1 + $0x64] sm:$0xf0] }
   0xe   : > { %v688_v7 = vor.u32 %v769_v2, %v685_v4  ;;  %v767_v8 = vld [vmem:[%s1014_s1 + $0x64] sm:$0xf]  ;;  %v677_v9 = vld [vmem:[%s1014_s1 + $0x68] sm:$0xf0]  ;;  %v676_v10 = vor.u32 %v768_v6, %v675_v5  ;;  %v667_v12 = vld [vmem:[%s1014_s1 + $0x50] sm:$0xf] }
   0xf   : > { %337 = vmatpush.bf16.msra.mxu0 %v684_v3  ;;  %v680_v11 = vor.u32 %v767_v8, %v677_v9  ;;  %v766_v13 = vld [vmem:[%s1014_s1 + $0x54] sm:$0xf0]  ;;  %v765_v14 = vld [vmem:[%s1014_s1 + $0x54] sm:$0xf]  ;;  %v669_v15 = vld [vmem:[%s1014_s1 + $0x58] sm:$0xf0] }
  0x10   : > { %356 = vmatpush.bf16.msra.mxu1 %v688_v7  ;;  %v668_v16 = vor.u32 %v766_v13, %v667_v12  ;;  %v672_v17 = vor.u32 %v765_v14, %v669_v15  ;;  %v659_v18 = vld [vmem:[%s1014_s1 + $0x40] sm:$0xf]  ;;  %v764_v19 = vld [vmem:[%s1014_s1 + $0x44] sm:$0xf0]  ;;  %v763_v20 = vld [vmem:[%s1014_s1 + $0x44] sm:$0xf] }
  0x11   : > { %v661_v21 = vld [vmem:[%s1014_s1 + $0x48] sm:$0xf0]  ;;  %v660_v22 = vor.u32 %v764_v19, %v659_v18  ;;  %v651_v24 = vld [vmem:[%s1014_s1 + $0x30] sm:$0xf]  ;;  %v762_v25 = vld [vmem:[%s1014_s1 + $0x34] sm:$0xf0] }
  0x12   : > { %v664_v23 = vor.u32 %v763_v20, %v661_v21  ;;  %v761_v26 = vld [vmem:[%s1014_s1 + $0x34] sm:$0xf]  ;;  %v653_v27 = vld [vmem:[%s1014_s1 + $0x38] sm:$0xf0]  ;;  %v652_v28 = vor.u32 %v762_v25, %v651_v24  ;;  %v643_v30 = vld [vmem:[%s1014_s1 + $0x20] sm:$0xf] }
  0x13   : > { %338 = vmatpush.bf16.msra.mxu0 %v676_v10  ;;  %v656_v29 = vor.u32 %v761_v26, %v653_v27  ;;  %v760_v31 = vld [vmem:[%s1014_s1 + $0x24] sm:$0xf0]  ;;  %v759_v32 = vld [vmem:[%s1014_s1 + $0x24] sm:$0xf]  ;;  %v645_v33 = vld [vmem:[%s1014_s1 + $0x28] sm:$0xf0] }
  0x14   : > { %357 = vmatpush.bf16.msra.mxu1 %v680_v11  ;;  %s1020_s29 = smov (!%p218_p3, %s621_s29), 15  ;;  %v644_v34 = vor.u32 %v760_v31, %v643_v30  ;;  %v778_v35 = vld [vmem:[%s1016_s3 + $0x38] sm:$0xff]  ;;  %v648_v37 = vor.u32 %v759_v32, %v645_v33  ;;  %v635_v38 = vld [vmem:[%s1014_s1 + $0x10] sm:$0xf]  ;;  %v757_v40 = vld [vmem:[%s1014_s1 + $0x14] sm:$0xf] }
  0x15   : > { %v786_v36 = vld [vmem:[%s1016_s3 + $0x78] sm:$0xff]  ;;  %s622_s9 = sshll.u32 %s1020_s29, 3  ;;  %517 = vmatpush.bf16.msra.mxu2 %v778_v35  ;;  %v777_v42 = vld [vmem:[%s1016_s3 + $0x30] sm:$0xff]  ;;  %v627_v46 = vld [vmem:[%s1014_s1] sm:$0xf]  ;;  %vm555_vm0 = vcmask 64512  }
  0x16   : > { %v758_v39 = vld [vmem:[%s1014_s1 + $0x14] sm:$0xf0]  ;;  %v637_v41 = vld [vmem:[%s1014_s1 + $0x18] sm:$0xf0]  ;;  %536 = vmatpush.bf16.msra.mxu3 %v786_v36  ;;  %v785_v43 = vld [vmem:[%s1016_s3 + $0x70] sm:$0xff]  ;;  %s221_s23 = scalar_lea.vmem %s1013_s0, %s622_s9  ;;  %s227_s7 = scalar_lea.vmem %s1018_s5, %s622_s9 }
  0x17   : > { %339 = vmatpush.bf16.msra.mxu0 %v668_v16  ;;  %v636_v44 = vor.u32 %v758_v39, %v635_v38  ;;  %v640_v45 = vor.u32 %v757_v40, %v637_v41  ;;  %v756_v47 = vld [vmem:[%s1014_s1 + $0x4] sm:$0xf0]  ;;  %v755_v48 = vld [vmem:[%s1014_s1 + $0x4] sm:$0xf]  ;;  %v629_v49 = vld [vmem:[%s1014_s1 + $0x8] sm:$0xf0] }
  0x18   : > { %358 = vmatpush.bf16.msra.mxu1 %v672_v17  ;;  %v776_v50 = vld [vmem:[%s1016_s3 + $0x28] sm:$0xff]  ;;  %v628_v52 = vor.u32 %v756_v47, %v627_v46  ;;  %v229_v53 = vld [vmem:[%s221_s23] sm:$0xff]  ;;  %v632_v55 = vor.u32 %v755_v48, %v629_v49  ;;  %v231_v59 = vld [vmem:[%s221_s23 + $0x10] sm:$0xff] }
  0x19   : > { %518 = vmatpush.bf16.msra.mxu2 %v777_v42  ;;  %v784_v51 = vld [vmem:[%s1016_s3 + $0x68] sm:$0xff]  ;;  %v775_v56 = vld [vmem:[%s1016_s3 + $0x20] sm:$0xff]  ;;  %v232_v60 = vld [vmem:[%s221_s23 + $0x18] sm:$0xff] }
  0x1a   : > { %537 = vmatpush.bf16.msra.mxu3 %v785_v43  ;;  %v230_v54 = vld [vmem:[%s221_s23 + $0x8] sm:$0xff]  ;;  %v783_v57 = vld [vmem:[%s1016_s3 + $0x60] sm:$0xff]  ;;  %v234_v61 = vpack.c.bf16 %v232_v60, %v231_v59  ;;  %v774_v62 = vld [vmem:[%s1016_s3 + $0x18] sm:$0xff] }
  0x1b   : > { %340 = vmatpush.bf16.msra.mxu0 %v660_v22  ;;  %v233_v58 = vpack.c.bf16 %v230_v54, %v229_v53  ;;  %v782_v63 = vld [vmem:[%s1016_s3 + $0x58] sm:$0xff]  ;;  %v773_v0 = vld [vmem:[%s1016_s3 + $0x10] sm:$0xff]  ;;  %v772_v2 = vld [vmem:[%s1016_s3 + $0x8] sm:$0xff] }
  0x1c   : > { %359 = vmatpush.bf16.msra.mxu1 %v664_v23  ;;  %v781_v1 = vld [vmem:[%s1016_s3 + $0x50] sm:$0xff]  ;;  %v780_v3 = vld [vmem:[%s1016_s3 + $0x48] sm:$0xff]  ;;  %v771_v4 = vld [vmem:[%s1016_s3] sm:$0xff] }
  0x1d   : > { %519 = vmatpush.bf16.msra.mxu2 %v776_v50  ;;  %v779_v5 = vld [vmem:[%s1016_s3 + $0x40] sm:$0xff] }
  0x1e   : > { %538 = vmatpush.bf16.msra.mxu3 %v784_v51  ;;  %v251_v6 = vld [vmem:[%s1015_s2] sm:$0x3] }
  0x1f   : > { %341 = vmatpush.bf16.msra.mxu0 %v652_v28  ;;  %v253_v9 = vperm.slane %v251_v6, 0  ;;  %v254_v10 = vperm.slane %v251_v6, 1 }
  0x20   : > { %360 = vmatpush.bf16.msra.mxu1 %v656_v29 }
  0x21   : > { %520 = vmatpush.bf16.msra.mxu2 %v775_v56 }
  0x22   : > { %539 = vmatpush.bf16.msra.mxu3 %v783_v57 }
  0x23   : > { %342 = vmatpush.bf16.msra.mxu0 %v644_v34 }
  0x24   : > { %361 = vmatpush.bf16.msra.mxu1 %v648_v37  ;;  %v420_v37 = vstv %s419_s28 }
  0x25   : > { %521 = vmatpush.bf16.msra.mxu2 %v774_v62 }
  0x26   : > { %540 = vmatpush.bf16.msra.mxu3 %v782_v63 }
  0x27   : > { %343 = vmatpush.bf16.msra.mxu0 %v636_v44 }
  0x28   : > { %362 = vmatpush.bf16.msra.mxu1 %v640_v45 }
  0x29   : > { %522 = vmatpush.bf16.msra.mxu2 %v773_v0 }
  0x2a   : > { %541 = vmatpush.bf16.msra.mxu3 %v781_v1 }
  0x2b   : > { %344 = vmatpush.bf16.msra.mxu0 %v628_v52 }
  0x2c   : > { %363 = vmatpush.bf16.msra.mxu1 %v632_v55 }
  0x2d   : > { %523 = vmatpush.bf16.msra.mxu2 %v772_v2 }
  0x2e   : > { %345 = vmatmul.bf16.vlgmr.msra.gmra.mxu0 %v233_v58  ;;  %542 = vmatpush.bf16.msra.mxu3 %v780_v3 }
  0x2f   : > { %364 = vmatmul.bf16.vlgmr.msra.gmra.mxu1 %v233_v58 }
  0x31   : > { %524 = vmatpush.bf16.msra.mxu2 %v771_v4 }
  0x32   : > { %543 = vmatpush.bf16.msra.mxu3 %v779_v5 }
  0x3e   : > { %350 = vmatmul.bf16.gmra.mxu0 %v234_v61 }
  0x3f   : > { %369 = vmatmul.bf16.gmra.mxu1 %v234_v61 }
  0xab   : > { %v346_v7 = vpop.f32.mrf.mxu0 }
  0xac   : > { %v365_v8 = vpop.f32.mrf.mxu1  ;;  %v347_v11 = vadd.f32 %v346_v7, %v253_v9 }
  0xad   : > { %v366_v12 = vadd.f32 %v365_v8, %v254_v10 }
  0xae   : > { %v375_v17 = vmax.f32 %v347_v11, 0.0 }
  0xaf   : > { %v376_v19 = vmax.f32 %v366_v12, 0.0 }
  0xb3   : > { %v348_v13 = vpop.f32.mrf.mxu0 }
  0xb4   : > { %v349_v14 = vadd.f32 %v348_v13, %v253_v9  ;;  %v367_v15 = vpop.f32.mrf.mxu1 }
  0xb5   : > { %v368_v16 = vadd.f32 %v367_v15, %v254_v10 }
  0xb6   : > { %v377_v18 = vmax.f32 %v349_v14, 0.0 }
  0xb7   : > { %v378_v20 = vmax.f32 %v368_v16, 0.0 }
  0xb8   : > { %v383_v21 = vpack.c.bf16 %v377_v18, %v375_v17 }
  0xb9   : > { %v384_v22 = vpack.c.bf16 %v378_v20, %v376_v19 }
  0xba   : > { %525 = vmatmul.bf16.vlgmr.msra.gmra.mxu2 %v383_v21 }
  0xbb   : > { %544 = vmatmul.bf16.vlgmr.msra.gmra.mxu3 %v384_v22  ;;  %v351_v23 = vpop.f32.mrf.mxu0 }
  0xbc   : > { %v370_v24 = vpop.f32.mrf.mxu1  ;;  %v352_v25 = vadd.f32 %v351_v23, %v253_v9 }
  0xbd   : > { %v371_v26 = vadd.f32 %v370_v24, %v254_v10 }
  0xbe   : > { %v379_v31 = vmax.f32 %v352_v25, 0.0 }
  0xbf   : > { %v380_v33 = vmax.f32 %v371_v26, 0.0 }
  0xc3   : > { %v353_v27 = vpop.f32.mrf.mxu0 }
  0xc4   : > { %v354_v28 = vadd.f32 %v353_v27, %v253_v9  ;;  %v372_v29 = vpop.f32.mrf.mxu1 }
  0xc5   : > { %v373_v30 = vadd.f32 %v372_v29, %v254_v10 }
  0xc6   : > { %v381_v32 = vmax.f32 %v354_v28, 0.0 }
  0xc7   : > { %v382_v34 = vmax.f32 %v373_v30, 0.0 }
  0xc8   : > { %v385_v35 = vpack.c.bf16 %v381_v32, %v379_v31 }
  0xc9   : > { %v386_v36 = vpack.c.bf16 %v382_v34, %v380_v33 }
  0xca   : > { %530 = vmatmul.bf16.gmra.mxu2 %v385_v35 }
  0xcb   : > { %549 = vmatmul.bf16.gmra.mxu3 %v386_v36 }
 0x13d   : > { %v526_v38 = vpop.f32.mrf.mxu2 }
 0x13e   : > { %v527_v39 = vadd.f32 %v526_v38, %v420_v37  ;;  %v545_v40 = vpop.f32.mrf.mxu3 }
 0x140   : > { %v546_v41 = vadd.f32 %v545_v40, %v527_v39 }
 0x142   : > { %556 = vst.msk [vmem:[%s227_s7] sm:$0xff] %vm555_vm0, %v546_v41 }
 0x145   : > { %v528_v42 = vpop.f32.mrf.mxu2 }
 0x146   : > { %v529_v43 = vadd.f32 %v528_v42, %v420_v37  ;;  %v547_v44 = vpop.f32.mrf.mxu3 }
 0x148   : > { %v548_v45 = vadd.f32 %v547_v44, %v529_v43 }
 0x14a   : > { %557 = vst.msk [vmem:[%s227_s7 + $0x8] sm:$0xff] %vm555_vm0, %v548_v45 }
 0x14d   : > { %v531_v46 = vpop.f32.mrf.mxu2 }
 0x14e   : > { %v532_v47 = vadd.f32 %v531_v46, %v420_v37  ;;  %v550_v48 = vpop.f32.mrf.mxu3 }
 0x150   : > { %v551_v49 = vadd.f32 %v550_v48, %v532_v47 }
 0x152   : > { %558 = vst.msk [vmem:[%s227_s7 + $0x10] sm:$0xff] %vm555_vm0, %v551_v49 }
 0x155   : > { %v533_v50 = vpop.f32.mrf.mxu2 }
 0x156   : > { %v534_v51 = vadd.f32 %v533_v50, %v420_v37  ;;  %v552_v52 = vpop.f32.mrf.mxu3 }
 0x158   : > { %v553_v53 = vadd.f32 %v552_v52, %v534_v51 }
 0x15a   : > { %559 = vst.msk [vmem:[%s227_s7 + $0x18] sm:$0xff] %vm555_vm0, %v553_v53 }
 0x15b PF: > { %s16_s20 = sadd.s32 1, %s801_s20  }
 0x15c   : > { %p13_p4 = scmp.ge.s32.totalorder %s16_s20, 6  }
 0x15e   :  { %15 = sbr.rel (!%p13_p4) target bundleno = 2 (0x2), region = 70 }

</bundles_post_ra>
